<compile_context>
chip_gen: v7x
topology: tpu7x:2x2x1
jax: 0.10.0
libtpu: 0.0.40
codegen_flags: <defaults>
</compile_context>

<pallas_src>
import jax
import jax.numpy as jnp
import numpy as np
from jax.experimental import pallas as pl
from jax.experimental.pallas import tpu as pltpu


def basic_att_kernel(x_ref, mask_ref, w1_ref, b1_ref, w2_ref, v2_ref, out_ref):
    # x_ref   : (G*M, D0)  all rows of all batch elements / heads, G = B*H
    # mask_ref: (G, 1, M)  f32 indicator: 1.0 where att_mask == 0 (masked out)
    # w1_ref  : (D0, D1)   b1_ref: (1, D1)    w2_ref: (1, D1)
    # v2_ref  : (G, M, Dv) out_ref: (G, 1, Dv)
    G, _, M = mask_ref.shape
    D1 = w1_ref.shape[1]

    # attention_basic: ONE MXU matmul for every (batch, head, key) row,
    # f32 accumulation; bias + ReLU on the VPU. (Dropout == identity in eval.)
    h = jnp.dot(x_ref[...], w1_ref[...], preferred_element_type=jnp.float32)
    h = jnp.maximum(h + b1_ref[...], 0.0)                       # (G*M, D1)

    # attention_last (D1 -> 1) as a VPU broadcast-mul + lane reduce; b2 is
    # dropped (softmax is shift-invariant).  The reduce result is laid out as
    # (G, 1, M), i.e. M lands on the LANE axis for the whole softmax path.
    hw = h * w2_ref[...]                                        # (G*M, D1)
    logits = jnp.sum(hw.reshape(G, 1, M, D1), axis=-1)          # (G, 1, M)

    # masked_fill(att_mask == 0, -1e9); the ==0 test was done exactly in the
    # wrapper on the original mask dtype.
    logits = jnp.where(mask_ref[...] > 0.5, jnp.float32(-1e9), logits)

    # Softmax over M (lane axis).  Exact normalization: the denominator is a
    # handful of values, so the approx-reciprocal error is not worth it.
    mx = jnp.max(logits, axis=-1, keepdims=True)                # (G, 1, 1)
    p = jnp.exp(logits - mx)                                    # (G, 1, M)
    s = jnp.sum(p, axis=-1, keepdims=True)                      # (G, 1, 1)
    wgt = p / s                                                 # (G, 1, M)

    # attn = weights @ value2 as a batched MXU contraction over M:
    # per (batch*head) row a (1, M) @ (M, Dv) matmul with f32 accumulation.
    # This is the path that scales to production-sized M.
    attn = jnp.einsum('gqm,gmd->gqd',
                      wgt.astype(v2_ref.dtype), v2_ref[...],
                      preferred_element_type=jnp.float32)       # (G, 1, Dv)
    out_ref[...] = attn.astype(out_ref.dtype)


def basic_att(att_map, att_mask, value1, value2, params):
    """att_map: [B,H,M,D0], att_mask: [B,M], value2: [B,H,M,Dv] -> [B,H,Dv]."""
    del value1                       # unused by the PyTorch forward
    w1, b1, w2, _b2 = params         # b2 dropped: softmax-invariant constant shift
    B, H, M, D0 = att_map.shape
    Dv = value2.shape[-1]
    D1 = w1.shape[1]
    G = B * H

    # Contiguous (free) reshapes only — no transposes, no dtype force-casts,
    # so a bf16 producer feeds bf16 straight into the MXU contractions.
    x = att_map.reshape(G * M, D0)
    v2 = value2.reshape(G, M, Dv)
    b1_r = b1.reshape(1, D1)
    w2_r = w2.reshape(1, D1)
    # Exact ==0 test on the original mask dtype, then a tiny 0/1 f32 indicator
    # broadcast over heads, laid out with M on the lane axis.
    masked = jnp.broadcast_to((att_mask == 0)[:, None, :], (B, H, M))
    masked = masked.reshape(G, 1, M).astype(jnp.float32)

    # VMEM sizing guard: everything is whole-array resident in a single step.
    # TODO(synk): for production-sized M (or large B*H), add a grid over M /
    #             head chunks with an accumulator instead of whole-array
    #             residency (v7x has only 64 MiB physical VMEM).
    vmem_bytes = sum(int(a.size) * a.dtype.itemsize
                     for a in (x, masked, w1, b1_r, w2_r, v2)) + G * Dv * 4
    assert vmem_bytes < 24 * 1024 * 1024, (
        f"operands ({vmem_bytes} B) too large for single-step VMEM residency")

    out = pl.pallas_call(
        basic_att_kernel,
        out_shape=jax.ShapeDtypeStruct((G, 1, Dv), jnp.float32),
        # Single fused step: no grid -> no per-step fixed overhead or pipeline
        # bookkeeping (v5e/v6e are single-TensorCore, so a grid is a serial
        # loop at these shapes).  All operands live whole in VMEM.
        in_specs=[pl.BlockSpec(memory_space=pltpu.MemorySpace.VMEM)] * 6,
        out_specs=pl.BlockSpec(memory_space=pltpu.MemorySpace.VMEM),
        compiler_params=pltpu.CompilerParams(
            vmem_limit_bytes=32 * 1024 * 1024),
    )(x, masked, w1, b1_r, w2_r, v2)

    return out.reshape(B, H, Dv)


def basic_att_reference(att_map, att_mask, value2, params):
    # Pure-JAX reference (true-f32 precision), including b2, to prove that
    # dropping b2 in the kernel is semantics-preserving.
    w1, b1, w2, b2 = params
    hi = jax.lax.Precision.HIGHEST
    h = jnp.maximum(jnp.einsum('bhmd,de->bhme', att_map, w1, precision=hi) + b1, 0.0)
    logits = (jnp.einsum('bhme,eo->bhmo', h, w2, precision=hi) + b2)[..., 0]
    logits = jnp.where(att_mask[:, None, :] == 0, -1e9, logits)
    w = jax.nn.softmax(logits, axis=-1)
    return jnp.einsum('bhm,bhmd->bhd', w, value2, precision=hi)


if __name__ == "__main__":
    # Small shapes implied by the module: mid_dims = [32, 16, 1]
    B, H, M = 2, 4, 8
    D0, D1, D_last = 32, 16, 1
    Dv = 32

    key = jax.random.PRNGKey(0)
    k = jax.random.split(key, 7)

    att_map = jax.random.normal(k[0], (B, H, M, D0), dtype=jnp.float32)
    value1 = jax.random.normal(k[1], (B, H, M, Dv), dtype=jnp.float32)  # unused
    value2 = jax.random.normal(k[2], (B, H, M, Dv), dtype=jnp.float32)
    # mask with some zeros (last 2 positions of batch 1 masked out)
    att_mask = jnp.ones((B, M), dtype=jnp.float32).at[1, -2:].set(0.0)

    # Deterministic parameter init (Linear(D0,D1), Linear(D1,1))
    w1 = jax.random.normal(k[3], (D0, D1), dtype=jnp.float32) * 0.1
    b1 = jax.random.normal(k[4], (D1,), dtype=jnp.float32) * 0.1
    w2 = jax.random.normal(k[5], (D1, D_last), dtype=jnp.float32) * 0.1
    b2 = jax.random.normal(k[6], (D_last,), dtype=jnp.float32) * 0.1
    params = (w1, b1, w2, b2)

    out = basic_att(att_map, att_mask, value1, value2, params)
    out = jax.block_until_ready(out)

    ref = basic_att_reference(att_map, att_mask, value2, params)
    # Exact softmax normalization (no approx reciprocal) -> tighter tolerance
    # than v2; remaining slack covers f32-on-MXU multi-pass vs XLA reference.
    np.testing.assert_allclose(np.asarray(out), np.asarray(ref),
                               rtol=2e-3, atol=2e-3)
    print("KERNEL_OK")
</pallas_src>

<mosaic_0001>
module attributes {stable_mosaic.version = 11 : i64} {
  func.func @basic_att_kernel(%arg0: memref<64x32xf32, #tpu.memory_space<vmem>>, %arg1: memref<8x1x8xf32, #tpu.memory_space<vmem>>, %arg2: memref<32x16xf32, #tpu.memory_space<vmem>>, %arg3: memref<1x16xf32, #tpu.memory_space<vmem>>, %arg4: memref<1x16xf32, #tpu.memory_space<vmem>>, %arg5: memref<8x8x32xf32, #tpu.memory_space<vmem>>, %arg6: memref<8x1x32xf32, #tpu.memory_space<vmem>>) attributes {dimension_semantics = [], scalar_prefetch = 0 : i64, scratch_operands = 0 : i64, tpu.core_type = #tpu.core_type<tc>} {
    %c0 = arith.constant 0 : index
    %c0_0 = arith.constant 0 : index
    %0 = vector.load %arg0[%c0, %c0_0] : memref<64x32xf32, #tpu.memory_space<vmem>>, vector<64x32xf32>
    %c0_1 = arith.constant 0 : index
    %c0_2 = arith.constant 0 : index
    %1 = vector.load %arg2[%c0_1, %c0_2] : memref<32x16xf32, #tpu.memory_space<vmem>>, vector<32x16xf32>
    %cst = arith.constant dense<0.000000e+00> : vector<64x16xf32>
    %2 = tpu.matmul %0, %1, %cst {dimension_numbers = #tpu.dot_dimension_numbers<[1], [0], [0], [1], [0, 0, 1, 1], [], []>} : vector<64x32xf32>, vector<32x16xf32>, vector<64x16xf32> -> vector<64x16xf32>
    %c0_3 = arith.constant 0 : index
    %c0_4 = arith.constant 0 : index
    %3 = vector.load %arg3[%c0_3, %c0_4] : memref<1x16xf32, #tpu.memory_space<vmem>>, vector<1x16xf32>
    %4 = vector.broadcast %3 : vector<1x16xf32> to vector<64x16xf32>
    %5 = arith.addf %2, %4 : vector<64x16xf32>
    %cst_5 = arith.constant 0.000000e+00 : f32
    %6 = vector.broadcast %cst_5 : f32 to vector<64x16xf32>
    %7 = arith.maximumf %5, %6 : vector<64x16xf32>
    %c0_6 = arith.constant 0 : index
    %c0_7 = arith.constant 0 : index
    %8 = vector.load %arg4[%c0_6, %c0_7] : memref<1x16xf32, #tpu.memory_space<vmem>>, vector<1x16xf32>
    %9 = vector.broadcast %8 : vector<1x16xf32> to vector<64x16xf32>
    %10 = arith.mulf %7, %9 : vector<64x16xf32>
    %11 = vector.shape_cast %10 : vector<64x16xf32> to vector<8x1x8x16xf32>
    %cst_8 = arith.constant dense<0.000000e+00> : vector<8x1x8xf32>
    %12 = vector.multi_reduction <add>, %11, %cst_8 [3] : vector<8x1x8x16xf32> to vector<8x1x8xf32>
    %c0_9 = arith.constant 0 : index
    %c0_10 = arith.constant 0 : index
    %c0_11 = arith.constant 0 : index
    %13 = vector.load %arg1[%c0_9, %c0_10, %c0_11] : memref<8x1x8xf32, #tpu.memory_space<vmem>>, vector<8x1x8xf32>
    %cst_12 = arith.constant 5.000000e-01 : f32
    %14 = vector.broadcast %cst_12 : f32 to vector<8x1x8xf32>
    %15 = arith.cmpf ogt, %13, %14 : vector<8x1x8xf32>
    %cst_13 = arith.constant -1.000000e+09 : f32
    %16 = vector.broadcast %cst_13 : f32 to vector<8x1x8xf32>
    %17 = arith.select %15, %16, %12 : vector<8x1x8xi1>, vector<8x1x8xf32>
    %cst_14 = arith.constant dense<0xFF800000> : vector<8x1xf32>
    %18 = vector.multi_reduction <maximumf>, %17, %cst_14 [2] : vector<8x1x8xf32> to vector<8x1xf32>
    %19 = vector.shape_cast %18 : vector<8x1xf32> to vector<8x1x1xf32>
    %20 = vector.broadcast %19 : vector<8x1x1xf32> to vector<8x1x8xf32>
    %21 = arith.subf %17, %20 : vector<8x1x8xf32>
    %22 = math.exp %21 : vector<8x1x8xf32>
    %cst_15 = arith.constant dense<0.000000e+00> : vector<8x1xf32>
    %23 = vector.multi_reduction <add>, %22, %cst_15 [2] : vector<8x1x8xf32> to vector<8x1xf32>
    %24 = vector.shape_cast %23 : vector<8x1xf32> to vector<8x1x1xf32>
    %25 = vector.broadcast %24 : vector<8x1x1xf32> to vector<8x1x8xf32>
    %26 = arith.divf %22, %25 : vector<8x1x8xf32>
    %c0_16 = arith.constant 0 : index
    %c0_17 = arith.constant 0 : index
    %c0_18 = arith.constant 0 : index
    %27 = vector.load %arg5[%c0_16, %c0_17, %c0_18] : memref<8x8x32xf32, #tpu.memory_space<vmem>>, vector<8x8x32xf32>
    "tpu.trace_start"() <{level = 10 : i32, message = "gqm,gmd->gqd"}> : () -> ()
    %cst_19 = arith.constant dense<0.000000e+00> : vector<8x1x32xf32>
    %28 = tpu.matmul %26, %27, %cst_19 {dimension_numbers = #tpu.dot_dimension_numbers<[2], [1], [1], [2], [0, 0, 0, 1, 1, 2], [0], [0]>} : vector<8x1x8xf32>, vector<8x8x32xf32>, vector<8x1x32xf32> -> vector<8x1x32xf32>
    "tpu.trace_stop"() : () -> ()
    %c0_20 = arith.constant 0 : index
    %c0_21 = arith.constant 0 : index
    %c0_22 = arith.constant 0 : index
    %29 = vector.load %arg6[%c0_20, %c0_21, %c0_22] : memref<8x1x32xf32, #tpu.memory_space<vmem>>, vector<8x1x32xf32>
    tpu.vector_store %arg6[%c0_20, %c0_21, %c0_22], %28 {strides = array<i32>} : memref<8x1x32xf32, #tpu.memory_space<vmem>>, vector<8x1x32xf32>,
    return
  }
}

</mosaic_0001>

<bundles_post_ra>
// kernel: tpu_custom_call.1
= control target key start
LH: loop header
LB: loop body
LE: loop exit
PB: predicated region body
PF: predicated region fallthrough
CT: control target
= control target key end

     0   :  { %vm43_vm0 = vcmask 261120   ;;  %s2375_s0 = inlined_call_operand.vmem [shape: f32[64,32], index: 0, kind: input, shape index: {}]   ;;  %s2376_s1 = inlined_call_operand.vmem [shape: f32[8,1,8], index: 1, kind: input, shape index: {}]   ;;  %s2377_s2 = inlined_call_operand.vmem [shape: f32[32,16], index: 2, kind: input, shape index: {}]   ;;  %s2378_s3 = inlined_call_operand.vmem [shape: f32[1,16], index: 3, kind: input, shape index: {}]   ;;  %s2379_s4 = inlined_call_operand.vmem [shape: f32[1,16], index: 4, kind: input, shape index: {}]   ;;  %s2380_s5 = inlined_call_operand.vmem [shape: f32[8,8,32], index: 5, kind: input, shape index: {}]   ;;  %s2381_s6 = inlined_call_operand.hbm [shape: f32[8,1,32], index: 6, kind: output, shape index: {}]  }
   0x1   :  { %v32_v0 = vld [vmem:[%s2377_s2] sm:$0xff]  ;;  %v33_v1 = vld [vmem:[%s2377_s2 + $0x8] sm:$0xff]  ;;  %v34_v2 = vld [vmem:[%s2377_s2 + $0x10] sm:$0xff] }
   0x2   :  { %v1892_v3 = vpack.c.bf16 %v33_v1, %v32_v0  ;;  %v35_v4 = vld [vmem:[%s2377_s2 + $0x18] sm:$0xff]  ;;  %v24_v5 = vld [vmem:[%s2375_s0] sm:$0xff] }
   0x3   :  { %v1896_v6 = vpack.c.bf16 %v35_v4, %v34_v2  ;;  %1840 = vmatprep.mubr.msk.f32.mxu0 %vm43_vm0, %v24_v5 }
   0x4   :  { %1893 = vmatprep.subr.bf16.mxu0 %v1892_v3 }
   0x5   :  { %1895 = vmatpush3.bf16.msra.mxu0 %v1892_v3 }
   0x6   :  { %11 = vsyncpa [#allocation3], 0  ;;  %1897 = vmatprep.subr.bf16.mxu0 %v1896_v6  ;;  %v25_v7 = vld [vmem:[%s2375_s0 + $0x8] sm:$0xff]  ;;  %v26_v8 = vld [vmem:[%s2375_s0 + $0x10] sm:$0xff]  ;;  %vm196_vm1 = vcmask 130048   ;;  %v1965_v56 = vmov 0   ;;  %v245_v57 = vlaneseq }
   0x7   :  { %v27_v9 = vld [vmem:[%s2375_s0 + $0x18] sm:$0xff]  ;;  %v28_v10 = vld [vmem:[%s2375_s0 + $0x20] sm:$0xff]  ;;  %v29_v11 = vld [vmem:[%s2375_s0 + $0x28] sm:$0xff]  ;;  %1907 = vset.pattern.permute.xlu0 %v1965_v56  ;;  %1908 = vset.pattern.permute.xlu1 %v1965_v56  ;;  %v1966_v61 = vmov 1966171168   ;;  %vm1079_vm3 = vcmask 57344  }
   0x8   :  { %v30_v12 = vld [vmem:[%s2375_s0 + $0x30] sm:$0xff]  ;;  %v31_v13 = vld [vmem:[%s2375_s0 + $0x38] sm:$0xff]  ;;  %v1786_v14 = vld [vmem:[%s2378_s3] ss:$0 sm:$0xff]  ;;  %v246_v58 = vshrl.u32 %v245_v57, 7  ;;  %v918_v59 = vand.u32 127, %v245_v57  ;;  %v506_v62 = vunpack.c.l.s4 %v1966_v61 }
   0x9   :  { %1899 = vmatpush3.bf16.msra.mxu0 %v1896_v6  ;;  %v1795_v19 = vld [vmem:[%s2379_s4] ss:$0 sm:$0xff]  ;;  %vm1968_vm11 = vmmov 0   ;;  %vm1176_vm12 = vcmask 64512   ;;  %vm1761_vm13 = vcmask 253952  }
   0xa   :  { %v2065_v60 = vsub.s32 %v918_v59, %v246_v58  ;;  %v507_v63 = vunpack.c.0.s8 %v506_v62  ;;  %v2067_v0 = vsub.s32 0, %v246_v58  ;;  %v2069_v1 = vsub.s32 1, %v246_v58 }
   0xb   :  { %v2071_v2 = vsub.s32 2, %v246_v58  ;;  %v2073_v3 = vsub.s32 3, %v246_v58  ;;  %v2075_v4 = vsub.s32 4, %v246_v58  ;;  %v2077_v5 = vsub.s32 5, %v246_v58 }
   0xc   :  { %1841 = vmatmul.mubr.msk.f32.vlgmr.msra.gmra.mrb[0].mxu0 %vm43_vm0, %v25_v7  ;;  %v2079_v6 = vsub.s32 6, %v246_v58  ;;  %v2081_v7 = vsub.s32 7, %v246_v58 }
   0xd   :  { %1843 = vmatprep.mubr.msk.f32.mxu0 %vm43_vm0, %v26_v8 }
  0x10   :  { %1844 = vmatmul.mubr.msk.f32.gmra.mrb[2].mxu0 %vm43_vm0, %v27_v9  ;;  %v2083_v9 = vsub.s32 %v507_v63, %v246_v58 }
  0x11   :  { %1846 = vmatprep.mubr.msk.f32.mxu0 %vm43_vm0, %v28_v10 }
  0x14   :  { %1847 = vmatmul.mubr.msk.f32.gmra.mrb[4].mxu0 %vm43_vm0, %v29_v11 }
  0x15   :  { %1849 = vmatprep.mubr.msk.f32.mxu0 %vm43_vm0, %v30_v12 }
  0x18   :  { %1850 = vmatmul.mubr.msk.f32.gmra.mrb[6].mxu0 %vm43_vm0, %v31_v13 }
  0xdf   :  { %v1842_v15 = vpop.f32.mrb[0].mxu0 }
  0xe0   :  { %v140_v16 = vadd.f32 %v1842_v15, %v1786_v14  ;;  %v134_v17 = vpop.f32.mrb[1].mxu0 }
  0xe1   :  { %v135_v18 = vadd.f32 %v1786_v14, %v134_v17 }
  0xe2   :  { %v174_v20 = vmax.f32 %v140_v16, 0.0 }
  0xe3   :  { %v173_v21 = vmax.f32 %v135_v18, 0.0  ;;  %v1845_v22 = vpop.f32.mrb[2].mxu0 }
  0xe4   :  { %v150_v23 = vadd.f32 %v1845_v22, %v1786_v14  ;;  %v144_v24 = vpop.f32.mrb[3].mxu0  ;;  %v189_v30 = vmul.f32 %v1795_v19, %v174_v20 }
  0xe5   :  { %v145_v25 = vadd.f32 %v1786_v14, %v144_v24  ;;  %v188_v26 = vmul.f32 %v1795_v19, %v173_v21 }
  0xe6   :  { %v176_v27 = vmax.f32 %v150_v23, 0.0  ;;  %v200_v38 = vsel %vm196_vm1, %v189_v30, 0.0 }
  0xe7   :  { %v175_v28 = vmax.f32 %v145_v25, 0.0  ;;  %v197_v29 = vsel %vm196_vm1, %v188_v26, 0.0  ;;  %v1848_v31 = vpop.f32.mrb[4].mxu0 }
  0xe8   :  { %198 = vadd.xlane.f32.xlu0 %v197_v29  ;;  %v160_v32 = vadd.f32 %v1848_v31, %v1786_v14  ;;  %v154_v33 = vpop.f32.mrb[5].mxu0  ;;  %v191_v40 = vmul.f32 %v1795_v19, %v176_v27 }
  0xe9   :  { %v190_v34 = vmul.f32 %v1795_v19, %v175_v28  ;;  %v155_v35 = vadd.f32 %v1786_v14, %v154_v33 }
  0xea   :  { %v178_v36 = vmax.f32 %v160_v32, 0.0  ;;  %v206_v48 = vsel %vm196_vm1, %v191_v40, 0.0 }
  0xeb   :  { %v203_v37 = vsel %vm196_vm1, %v190_v34, 0.0  ;;  %v177_v39 = vmax.f32 %v155_v35, 0.0  ;;  %v1851_v41 = vpop.f32.mrb[6].mxu0 }
  0xec   :  { %204 = vadd.xlane.f32.xlu1 %v203_v37  ;;  %201 = vadd.xlane.f32.xlu0 %v200_v38  ;;  %v170_v42 = vadd.f32 %v1851_v41, %v1786_v14  ;;  %v164_v43 = vpop.f32.mrb[7].mxu0  ;;  %v193_v45 = vmul.f32 %v1795_v19, %v178_v36 }
  0xed   :  { %v165_v44 = vadd.f32 %v1786_v14, %v164_v43  ;;  %v192_v46 = vmul.f32 %v1795_v19, %v177_v39 }
  0xee   :  { %v180_v47 = vmax.f32 %v170_v42, 0.0  ;;  %v212_v51 = vsel %vm196_vm1, %v193_v45, 0.0 }
  0xef   :  { %v179_v49 = vmax.f32 %v165_v44, 0.0  ;;  %v209_v50 = vsel %vm196_vm1, %v192_v46, 0.0 }
  0xf0   :  { %207 = vadd.xlane.f32.xlu1 %v206_v48  ;;  %210 = vadd.xlane.f32.xlu0 %v209_v50  ;;  %v195_v52 = vmul.f32 %v1795_v19, %v180_v47 }
  0xf1   :  { %v194_v53 = vmul.f32 %v1795_v19, %v179_v49 }
  0xf2   :  { %v218_v55 = vsel %vm196_vm1, %v195_v52, 0.0 }
  0xf3   :  { %v215_v54 = vsel %vm196_vm1, %v194_v53, 0.0 }
  0xf4   :  { %213 = vadd.xlane.f32.xlu1 %v212_v51  ;;  %216 = vadd.xlane.f32.xlu0 %v215_v54 }
  0xf8   :  { %219 = vadd.xlane.f32.xlu1 %v218_v55 }
 0x175   :  { %v199_v8 = vpop.xlane.xlu0 %198 }
 0x176   :  { %v248_v10 = vrot.slane %v199_v8, %v2067_v0  ;;  %v252_v11 = vrot.slane %v199_v8, %v2069_v1  ;;  %v256_v12 = vrot.slane %v199_v8, %v2071_v2  ;;  %v260_v13 = vrot.slane %v199_v8, %v2073_v3 }
 0x177   :  { %v264_v14 = vrot.slane %v199_v8, %v2075_v4  ;;  %v268_v15 = vrot.slane %v199_v8, %v2077_v5  ;;  %v272_v16 = vrot.slane %v199_v8, %v2079_v6  ;;  %v276_v17 = vrot.slane %v199_v8, %v2081_v7 }
 0x178   :  { %v501_v18 = vcombine.low %v248_v10, %v252_v11  ;;  %v502_v19 = vcombine.low %v256_v12, %v260_v13 }
 0x179   :  { %v2093_v20 = vpop.xlane.xlu1 %204  ;;  %v202_v21 = vpop.xlane.xlu0 %201  ;;  %v503_v22 = vcombine.low %v264_v14, %v268_v15  ;;  %v504_v23 = vcombine.low %v272_v16, %v276_v17 }
 0x17a   :  { %v511_v24 = vrot.slane %v501_v18, %v2083_v9  ;;  %v518_v25 = vrot.slane %v502_v19, %v2083_v9  ;;  %v280_v26 = vrot.slane %v202_v21, %v2067_v0  ;;  %v284_v27 = vrot.slane %v202_v21, %v2069_v1 }
 0x17b   :  { %v525_v28 = vrot.slane %v503_v22, %v2083_v9  ;;  %v532_v29 = vrot.slane %v504_v23, %v2083_v9  ;;  %v288_v30 = vrot.slane %v202_v21, %v2071_v2  ;;  %v292_v31 = vrot.slane %v202_v21, %v2073_v3 }
 0x17c   :  { %v533_v32 = vcombine.low %v511_v24, %v518_v25  ;;  %v296_v33 = vrot.slane %v202_v21, %v2075_v4  ;;  %v300_v34 = vrot.slane %v202_v21, %v2077_v5  ;;  %v304_v35 = vrot.slane %v202_v21, %v2079_v6 }
 0x17d   :  { %v208_v36 = vpop.xlane.xlu1 %207  ;;  %v534_v37 = vcombine.low %v525_v28, %v532_v29  ;;  %v308_v38 = vrot.slane %v202_v21, %v2081_v7  ;;  %v550_v39 = vcombine.low %v280_v26, %v284_v27  ;;  %v551_v40 = vcombine.low %v288_v30, %v292_v31 }
 0x17e   :  { %v541_v41 = vrot.slane %v533_v32, %v2083_v9  ;;  %v552_v42 = vcombine.low %v296_v33, %v300_v34  ;;  %v344_v43 = vrot.slane %v208_v36, %v2067_v0  ;;  %v348_v44 = vrot.slane %v208_v36, %v2069_v1 }
 0x17f   :  { %v548_v45 = vrot.slane %v534_v37, %v2083_v9  ;;  %v553_v46 = vcombine.low %v304_v35, %v308_v38  ;;  %v560_v47 = vrot.slane %v550_v39, %v2083_v9  ;;  %v567_v48 = vrot.slane %v551_v40, %v2083_v9  ;;  %v211_v40 = vpop.xlane.xlu0 %210 }
 0x180   :  { %v574_v49 = vrot.slane %v552_v42, %v2083_v9  ;;  %v352_v50 = vrot.slane %v208_v36, %v2071_v2  ;;  %v356_v51 = vrot.slane %v208_v36, %v2073_v3  ;;  %v360_v52 = vrot.slane %v208_v36, %v2075_v4 }
 0x181   :  { %v549_v53 = vcombine.low %v541_v41, %v548_v45  ;;  %v581_v54 = vrot.slane %v553_v46, %v2083_v9  ;;  %v582_v55 = vcombine.low %v560_v47, %v567_v48  ;;  %v364_v56 = vrot.slane %v208_v36, %v2077_v5  ;;  %v214_v19 = vpop.xlane.xlu1 %213 }
 0x182   :  { %v368_v57 = vrot.slane %v208_v36, %v2079_v6  ;;  %v372_v58 = vrot.slane %v208_v36, %v2081_v7  ;;  %v648_v59 = vcombine.low %v344_v43, %v348_v44  ;;  %v649_v61 = vcombine.low %v352_v50, %v356_v51 }
 0x183   :  { %894 = vperm.xlu0 %1907, %v549_v53   ;;  %v583_v62 = vcombine.low %v574_v49, %v581_v54  ;;  %v590_v63 = vrot.slane %v582_v55, %v2083_v9  ;;  %v650_v8 = vcombine.low %v360_v52, %v364_v56  ;;  %v312_v10 = vrot.slane %v2093_v20, %v2067_v0 }
 0x184   :  { %v651_v11 = vcombine.low %v368_v57, %v372_v58  ;;  %v658_v12 = vrot.slane %v648_v59, %v2083_v9  ;;  %v665_v13 = vrot.slane %v649_v61, %v2083_v9  ;;  %v316_v14 = vrot.slane %v2093_v20, %v2069_v1 }
 0x185   :  { %v597_v15 = vrot.slane %v583_v62, %v2083_v9  ;;  %v672_v16 = vrot.slane %v650_v8, %v2083_v9  ;;  %v320_v17 = vrot.slane %v2093_v20, %v2071_v2  ;;  %v324_v18 = vrot.slane %v2093_v20, %v2073_v3  ;;  %v217_v62 = vpop.xlane.xlu0 %216 }
 0x186   :  { %v679_v21 = vrot.slane %v651_v11, %v2083_v9  ;;  %v680_v22 = vcombine.low %v658_v12, %v665_v13  ;;  %v328_v23 = vrot.slane %v2093_v20, %v2075_v4  ;;  %v332_v24 = vrot.slane %v2093_v20, %v2077_v5 }
 0x187   :  { %v598_v25 = vcombine.low %v590_v63, %v597_v15  ;;  %v336_v26 = vrot.slane %v2093_v20, %v2079_v6  ;;  %v340_v27 = vrot.slane %v2093_v20, %v2081_v7  ;;  %v599_v28 = vcombine.low %v312_v10, %v316_v14 }
 0x188   :  { %v681_v29 = vcombine.low %v672_v16, %v679_v21  ;;  %v688_v30 = vrot.slane %v680_v22, %v2083_v9  ;;  %v600_v31 = vcombine.low %v320_v17, %v324_v18  ;;  %v601_v32 = vcombine.low %v328_v23, %v332_v24 }
 0x189   :  { %897 = vperm.xlu1 %1908, %v598_v25   ;;  %v602_v33 = vcombine.low %v336_v26, %v340_v27  ;;  %v609_v34 = vrot.slane %v599_v28, %v2083_v9  ;;  %v408_v35 = vrot.slane %v214_v19, %v2067_v0  ;;  %v412_v36 = vrot.slane %v214_v19, %v2069_v1 }
 0x18a   :  { %v695_v37 = vrot.slane %v681_v29, %v2083_v9  ;;  %v616_v38 = vrot.slane %v600_v31, %v2083_v9  ;;  %v623_v20 = vrot.slane %v601_v32, %v2083_v9  ;;  %v416_v39 = vrot.slane %v214_v19, %v2071_v2  ;;  %v220_v29 = vpop.xlane.xlu1 %219 }
 0x18b   :  { %v630_v41 = vrot.slane %v602_v33, %v2083_v9  ;;  %v420_v42 = vrot.slane %v214_v19, %v2073_v3  ;;  %v424_v43 = vrot.slane %v214_v19, %v2075_v4  ;;  %v428_v44 = vrot.slane %v214_v19, %v2077_v5 }
 0x18c   :  { %v696_v45 = vcombine.low %v688_v30, %v695_v37  ;;  %v631_v46 = vcombine.low %v609_v34, %v616_v38  ;;  %v432_v47 = vrot.slane %v214_v19, %v2079_v6  ;;  %v436_v48 = vrot.slane %v214_v19, %v2081_v7 }
 0x18d   :  { %v632_v49 = vcombine.low %v623_v20, %v630_v41  ;;  %v746_v50 = vcombine.low %v408_v35, %v412_v36  ;;  %v747_v51 = vcombine.low %v416_v39, %v420_v42  ;;  %v748_v52 = vcombine.low %v424_v43, %v428_v44 }
 0x18e   :  { %903 = vperm.xlu1 %1908, %v696_v45   ;;  %v639_v53 = vrot.slane %v631_v46, %v2083_v9  ;;  %v749_v54 = vcombine.low %v432_v47, %v436_v48  ;;  %v376_v55 = vrot.slane %v211_v40, %v2067_v0  ;;  %v380_v56 = vrot.slane %v211_v40, %v2069_v1 }
 0x18f   :  { %v646_v57 = vrot.slane %v632_v49, %v2083_v9  ;;  %v756_v58 = vrot.slane %v746_v50, %v2083_v9  ;;  %v763_v59 = vrot.slane %v747_v51, %v2083_v9  ;;  %v770_v61 = vrot.slane %v748_v52, %v2083_v9 }
 0x190   :  { %v777_v63 = vrot.slane %v749_v54, %v2083_v9  ;;  %v384_v8 = vrot.slane %v211_v40, %v2071_v2  ;;  %v388_v10 = vrot.slane %v211_v40, %v2073_v3  ;;  %v392_v11 = vrot.slane %v211_v40, %v2075_v4 }
 0x191   :  { %v647_v12 = vcombine.low %v639_v53, %v646_v57  ;;  %v778_v13 = vcombine.low %v756_v58, %v763_v59  ;;  %v396_v14 = vrot.slane %v211_v40, %v2077_v5  ;;  %v400_v15 = vrot.slane %v211_v40, %v2079_v6 }
 0x192   :  { %v779_v16 = vcombine.low %v770_v61, %v777_v63  ;;  %v404_v17 = vrot.slane %v211_v40, %v2081_v7  ;;  %v697_v18 = vcombine.low %v376_v55, %v380_v56  ;;  %v698_v19 = vcombine.low %v384_v8, %v388_v10 }
 0x193   :  { %900 = vperm.xlu1 %1908, %v647_v12   ;;  %v786_v21 = vrot.slane %v778_v13, %v2083_v9  ;;  %v699_v22 = vcombine.low %v392_v11, %v396_v14  ;;  %v440_v23 = vrot.slane %v217_v62, %v2067_v0  ;;  %v444_v24 = vrot.slane %v217_v62, %v2069_v1 }
 0x194   :  { %v793_v25 = vrot.slane %v779_v16, %v2083_v9  ;;  %v700_v26 = vcombine.low %v400_v15, %v404_v17  ;;  %v707_v27 = vrot.slane %v697_v18, %v2083_v9  ;;  %v714_v28 = vrot.slane %v698_v19, %v2083_v9  ;;  %v221_v17 = vld [vmem:[%s2376_s1] sm:$0x1] }
 0x195   :  { %v721_v30 = vrot.slane %v699_v22, %v2083_v9  ;;  %v448_v31 = vrot.slane %v217_v62, %v2071_v2  ;;  %v452_v32 = vrot.slane %v217_v62, %v2073_v3  ;;  %v456_v33 = vrot.slane %v217_v62, %v2075_v4 }
 0x196   :  { %v794_v34 = vcombine.low %v786_v21, %v793_v25  ;;  %v728_v35 = vrot.slane %v700_v26, %v2083_v9  ;;  %v729_v36 = vcombine.low %v707_v27, %v714_v28  ;;  %v460_v37 = vrot.slane %v217_v62, %v2077_v5 }
 0x197   :  { %v464_v38 = vrot.slane %v217_v62, %v2079_v6  ;;  %v468_v20 = vrot.slane %v217_v62, %v2081_v7  ;;  %v795_v39 = vcombine.low %v440_v23, %v444_v24  ;;  %v796_v40 = vcombine.low %v448_v31, %v452_v32  ;;  %v222_v24 = vld [vmem:[%s2376_s1 + $0x1] sm:$0x1] }
 0x198   :  { %909 = vperm.xlu1 %1908, %v794_v34   ;;  %v730_v41 = vcombine.low %v721_v30, %v728_v35  ;;  %v737_v42 = vrot.slane %v729_v36, %v2083_v9  ;;  %v797_v43 = vcombine.low %v456_v33, %v460_v37  ;;  %v472_v44 = vrot.slane %v220_v29, %v2067_v0  ;;  %v224_v30 = vld [vmem:[%s2376_s1 + $0x3] sm:$0x1]  ;;  %v223_v37 = vld [vmem:[%s2376_s1 + $0x2] sm:$0x1] }
 0x199   :  { %v798_v45 = vcombine.low %v464_v38, %v468_v20  ;;  %v805_v46 = vrot.slane %v795_v39, %v2083_v9  ;;  %v812_v47 = vrot.slane %v796_v40, %v2083_v9  ;;  %v476_v48 = vrot.slane %v220_v29, %v2069_v1 }
 0x19a   :  { %v744_v49 = vrot.slane %v730_v41, %v2083_v9  ;;  %v819_v50 = vrot.slane %v797_v43, %v2083_v9  ;;  %v480_v51 = vrot.slane %v220_v29, %v2071_v2  ;;  %v484_v52 = vrot.slane %v220_v29, %v2073_v3  ;;  %v226_v43 = vld [vmem:[%s2376_s1 + $0x5] sm:$0x1] }
 0x19b   :  { %v826_v53 = vrot.slane %v798_v45, %v2083_v9  ;;  %v827_v54 = vcombine.low %v805_v46, %v812_v47  ;;  %v488_v0 = vrot.slane %v220_v29, %v2075_v4  ;;  %v492_v55 = vrot.slane %v220_v29, %v2077_v5 }
 0x19c   :  { %v745_v56 = vcombine.low %v737_v42, %v744_v49  ;;  %v496_v57 = vrot.slane %v220_v29, %v2079_v6  ;;  %v500_v1 = vrot.slane %v220_v29, %v2081_v7  ;;  %v844_v58 = vcombine.low %v472_v44, %v476_v48 }
 0x19d   :  { %v828_v59 = vcombine.low %v819_v50, %v826_v53  ;;  %v835_v61 = vrot.slane %v827_v54, %v2083_v9  ;;  %v845_v62 = vcombine.low %v480_v51, %v484_v52  ;;  %v846_v2 = vcombine.low %v488_v0, %v492_v55  ;;  %v225_v51 = vld [vmem:[%s2376_s1 + $0x4] sm:$0x1] }
 0x19e   :  { %906 = vperm.xlu1 %1908, %v745_v56   ;;  %v847_v3 = vcombine.low %v496_v57, %v500_v1  ;;  %v854_v63 = vrot.slane %v844_v58, %v2083_v9  ;;  %vm229_vm2 = vcmp.gt.f32.partialorder %v221_v17, 0.5  ;;  %vm230_vm4 = vcmp.gt.f32.partialorder %v222_v24, 0.5  ;;  %v227_v56 = vld [vmem:[%s2376_s1 + $0x6] sm:$0x1] }
 0x19f   :  { %v842_v8 = vrot.slane %v828_v59, %v2083_v9  ;;  %v861_v4 = vrot.slane %v845_v62, %v2083_v9  ;;  %v868_v5 = vrot.slane %v846_v2, %v2083_v9  ;;  %vm232_vm5 = vcmp.gt.f32.partialorder %v224_v30, 0.5  ;;  %v228_v2 = vld [vmem:[%s2376_s1 + $0x7] sm:$0x1] }
 0x1a0   :  { %v875_v6 = vrot.slane %v847_v3, %v2083_v9  ;;  %vm231_vm6 = vcmp.gt.f32.partialorder %v223_v37, 0.5  ;;  %vm234_vm7 = vcmp.gt.f32.partialorder %v226_v43, 0.5  ;;  %vm233_vm8 = vcmp.gt.f32.partialorder %v225_v51, 0.5 }
 0x1a1   :  { %v843_v10 = vcombine.low %v835_v61, %v842_v8  ;;  %v876_v7 = vcombine.low %v854_v63, %v861_v4  ;;  %vm235_vm9 = vcmp.gt.f32.partialorder %v227_v56, 0.5  ;;  %vm236_vm10 = vcmp.gt.f32.partialorder %v228_v2, 0.5  ;;  %v1171_v2 = vld [vmem:[%s2380_s5 + $0x18] sm:$0xff] }
 0x1a2   :  { %v877_v11 = vcombine.low %v868_v5, %v875_v6 }
 0x1a3   :  { %912 = vperm.xlu1 %1908, %v843_v10   ;;  %v884_v12 = vrot.slane %v876_v7, %v2083_v9 }
 0x1a4   :  { %v891_v13 = vrot.slane %v877_v11, %v2083_v9 }
 0x1a6   :  { %v892_v14 = vcombine.low %v884_v12, %v891_v13 }
 0x1a8   :  { %915 = vperm.xlu1 %1908, %v892_v14  }
 0x202   :  { %v895_v15 = vpop.permute.xlu0 %894 }
 0x203   :  { %v922_v16 = vrot.slane %v895_v15, %v2065_v60 }
 0x205   :  { %v957_v18 = vrot.slane %v922_v16, %v2083_v9 }
 0x207   :  { %v964_v19 = vrot.slane %v957_v18, %v2083_v9 }
 0x208   :  { %v898_v21 = vpop.permute.xlu1 %897 }
 0x209   :  { %v926_v22 = vrot.slane %v898_v21, %v2065_v60  ;;  %v2214_v23 = vsel %vm229_vm2, -1e+09, %v964_v19 }
 0x20a   :  { %v1080_v25 = vsel %vm1079_vm3, %v2214_v23, -inf }
 0x20b   :  { %v971_v26 = vrot.slane %v926_v22, %v2083_v9  ;;  %1081 = vmax.xlane.f32.xlu1 %v1080_v25 }
 0x20d   :  { %v904_v27 = vpop.permute.xlu1 %903  ;;  %v978_v28 = vrot.slane %v971_v26, %v2083_v9 }
 0x20e   :  { %v934_v29 = vrot.slane %v904_v27, %v2065_v60 }
 0x20f   :  { %v1072_v31 = vsel %vm230_vm4, -1e+09, %v978_v28 }
 0x210   :  { %v999_v32 = vrot.slane %v934_v29, %v2083_v9  ;;  %v1083_v33 = vsel %vm1079_vm3, %v1072_v31, -inf }
 0x211   :  { %1084 = vmax.xlane.f32.xlu0 %v1083_v33 }
 0x212   :  { %v901_v34 = vpop.permute.xlu1 %900  ;;  %v1006_v35 = vrot.slane %v999_v32, %v2083_v9 }
 0x213   :  { %v930_v36 = vrot.slane %v901_v34, %v2065_v60 }
 0x214   :  { %v1074_v38 = vsel %vm232_vm5, -1e+09, %v1006_v35 }
 0x215   :  { %v985_v20 = vrot.slane %v930_v36, %v2083_v9  ;;  %v1089_v39 = vsel %vm1079_vm3, %v1074_v38, -inf }
 0x216   :  { %1090 = vmax.xlane.f32.xlu1 %v1089_v39 }
 0x217   :  { %v910_v40 = vpop.permute.xlu1 %909  ;;  %v992_v41 = vrot.slane %v985_v20, %v2083_v9 }
 0x218   :  { %v942_v42 = vrot.slane %v910_v40, %v2065_v60 }
 0x219   :  { %v1073_v44 = vsel %vm231_vm6, -1e+09, %v992_v41 }
 0x21a   :  { %v1027_v45 = vrot.slane %v942_v42, %v2083_v9  ;;  %v1086_v46 = vsel %vm1079_vm3, %v1073_v44, -inf }
 0x21b   :  { %1087 = vmax.xlane.f32.xlu0 %v1086_v46 }
 0x21c   :  { %v1034_v47 = vrot.slane %v1027_v45, %v2083_v9 }
 0x21d   :  { %v907_v48 = vpop.permute.xlu1 %906 }
 0x21e   :  { %v938_v49 = vrot.slane %v907_v48, %v2065_v60  ;;  %v1076_v50 = vsel %vm234_vm7, -1e+09, %v1034_v47  ;;  %v1967_v47 = vmov 0.0   ;;  %v1168_v48 = vld [vmem:[%s2380_s5] sm:$0xff] }
 0x21f   :  { %v1095_v52 = vsel %vm1079_vm3, %v1076_v50, -inf  ;;  %1852 = vmatprep.subr.mxu1 %v1967_v47  ;;  %1882 = vmatprep.subr.mxu0 %v1967_v47 }
 0x220   :  { %v1013_v53 = vrot.slane %v938_v49, %v2083_v9  ;;  %1096 = vmax.xlane.f32.xlu1 %v1095_v52  ;;  %1853 = vmatpush3.msra.mxu1 %v1168_v48  ;;  %v1174_v49 = vld [vmem:[%s2380_s5 + $0x30] sm:$0xff] }
 0x221   :  { %1854 = vmatprep.mubr.msk.f32.mxu1 %vm1968_vm11, %v1967_v47  ;;  %1857 = vmatprep.subr.mxu1 %v1967_v47 }
 0x222   :  { %v913_v54 = vpop.permute.xlu1 %912  ;;  %v1020_v0 = vrot.slane %v1013_v53, %v2083_v9  ;;  %1884 = vmatprep.mubr.msk.f32.mxu0 %vm1968_vm11, %v1967_v47  ;;  %1883 = vmatpush3.msra.mxu0 %v1174_v49 }
 0x223   :  { %v946_v55 = vrot.slane %v913_v54, %v2065_v60  ;;  %v1169_v54 = vld [vmem:[%s2380_s5 + $0x8] sm:$0xff] }
 0x224   :  { %v1075_v57 = vsel %vm233_vm8, -1e+09, %v1020_v0 }
 0x225   :  { %v1041_v1 = vrot.slane %v946_v55, %v2083_v9  ;;  %v1092_v58 = vsel %vm1079_vm3, %v1075_v57, -inf }
 0x226   :  { %1093 = vmax.xlane.f32.xlu0 %v1092_v58 }
 0x227   :  { %v916_v59 = vpop.permute.xlu1 %915  ;;  %v1048_v61 = vrot.slane %v1041_v1, %v2083_v9  ;;  %v1170_v1 = vld [vmem:[%s2380_s5 + $0x10] sm:$0xff] }
 0x228   :  { %v950_v62 = vrot.slane %v916_v59, %v2065_v60 }
 0x229   :  { %v1077_v3 = vsel %vm235_vm9, -1e+09, %v1048_v61 }
 0x22a   :  { %v1055_v63 = vrot.slane %v950_v62, %v2083_v9  ;;  %v1098_v8 = vsel %vm1079_vm3, %v1077_v3, -inf }
 0x22b   :  { %1099 = vmax.xlane.f32.xlu0 %v1098_v8 }
 0x22c   :  { %v1062_v4 = vrot.slane %v1055_v63, %v2083_v9 }
 0x22e   :  { %v1078_v5 = vsel %vm236_vm10, -1e+09, %v1062_v4  ;;  %v1172_v4 = vld [vmem:[%s2380_s5 + $0x20] sm:$0xff] }
 0x22f   :  { %v1101_v6 = vsel %vm1079_vm3, %v1078_v5, -inf }
 0x230   :  { %1102 = vmax.xlane.f32.xlu1 %v1101_v6 }
 0x298   :  { %v1082_v10 = vpop.xlane.xlu1 %1081 }
 0x299   :  { %v1104_v60 = vsub.f32 %v2214_v23, %v1082_v10 }
 0x29b   :  { %v1112_v7 = vmul.f32 1.442695, %v1104_v60  ;;  %v1173_v60 = vld [vmem:[%s2380_s5 + $0x28] sm:$0xff] }
 0x29d   :  { %1909 = vpow2.f32 %v1112_v7 }
 0x29e   :  { %v1085_v11 = vpop.xlane.xlu0 %1084 }
 0x29f   :  { %v1105_v12 = vsub.f32 %v1072_v31, %v1085_v11 }
 0x2a1   :  { %v1114_v13 = vmul.f32 1.442695, %v1105_v12 }
 0x2a3   :  { %1911 = vpow2.f32 %v1114_v13  ;;  %v1091_v14 = vpop.xlane.xlu1 %1090  ;;  %v1175_v13 = vld [vmem:[%s2380_s5 + $0x38] sm:$0xff]  ;;  %s1969_s5 = smov [#allocation2]  }
 0x2a4   :  { %v1107_v15 = vsub.f32 %v1074_v38, %v1091_v14  ;;  %s1775_s24 = sshll.u32 %s1969_s5, 4  ;;  %s1776_s24 = int_to_ptr.vmem [resolvable:$true] %s1775_s24 }
 0x2a5   :  { %s1941_s25 = scalar_lea.vmem %s1776_s24, 128  ;;  %p1946_p1 = scmp.lt.s32.totalorder %s1776_s24, %s1776_s24 }
 0x2a6   :  { %v1118_v16 = vmul.f32 1.442695, %v1107_v15  ;;  %p1942_p0 = scmp.ne.s32.totalorder %s1776_s24, %s1941_s25  ;;  %p1947_p2 = scmp.lt.s32.totalorder %s1941_s25, %s1941_s25 }
 0x2a7   :  { %v1910_v17 = vpop.eup %1909 }
 0x2a8   :  { %1913 = vpow2.f32 %v1118_v16  ;;  %v1088_v18 = vpop.xlane.xlu0 %1087  ;;  %v1128_v9 = vsel %vm1079_vm3, %v1910_v17, 0.0  ;;  %p1948_p3 = por %p1947_p2, %p1946_p1 }
 0x2a9   :  { %v1106_v19 = vsub.f32 %v1073_v44, %v1088_v18  ;;  %1129 = vadd.xlane.f32.xlu0 %v1128_v9 }
 0x2aa   :  { %p1949_p4 = pnand %p1948_p3, %p1942_p0 }
 0x2ab   :  { %v1116_v21 = vmul.f32 1.442695, %v1106_v19 }
 0x2ad   :  { %v2268_v22 = vpop.eup %1911  ;;  %1915 = vpow2.f32 %v1116_v21  ;;  %v1097_v23 = vpop.xlane.xlu1 %1096 }
 0x2ae   :  { %v1109_v24 = vsub.f32 %v1076_v50, %v1097_v23  ;;  %v1131_v25 = vsel %vm1079_vm3, %v2268_v22, 0.0 }
 0x2af   :  { %1132 = vadd.xlane.f32.xlu1 %v1131_v25 }
 0x2b0   :  { %v1122_v26 = vmul.f32 1.442695, %v1109_v24 }
 0x2b2   :  { %v2272_v27 = vpop.eup %1913  ;;  %1917 = vpow2.f32 %v1122_v26 }
 0x2b3   :  { %v1094_v28 = vpop.xlane.xlu0 %1093  ;;  %v1137_v29 = vsel %vm1079_vm3, %v2272_v27, 0.0 }
 0x2b4   :  { %v1108_v30 = vsub.f32 %v1075_v57, %v1094_v28  ;;  %1138 = vadd.xlane.f32.xlu1 %v1137_v29 }
 0x2b6   :  { %v1120_v31 = vmul.f32 1.442695, %v1108_v30 }
 0x2b7   :  { %v1916_v32 = vpop.eup %1915 }
 0x2b8   :  { %1919 = vpow2.f32 %v1120_v31  ;;  %v1100_v33 = vpop.xlane.xlu0 %1099  ;;  %v1134_v34 = vsel %vm1079_vm3, %v1916_v32, 0.0 }
 0x2b9   :  { %v1110_v35 = vsub.f32 %v1077_v3, %v1100_v33  ;;  %1135 = vadd.xlane.f32.xlu0 %v1134_v34 }
 0x2bb   :  { %v1124_v36 = vmul.f32 1.442695, %v1110_v35 }
 0x2bc   :  { %v2277_v37 = vpop.eup %1917 }
 0x2bd   :  { %1921 = vpow2.f32 %v1124_v36  ;;  %v1103_v38 = vpop.xlane.xlu1 %1102  ;;  %v1143_v20 = vsel %vm1079_vm3, %v2277_v37, 0.0 }
 0x2be   :  { %v1111_v39 = vsub.f32 %v1078_v5, %v1103_v38  ;;  %1144 = vadd.xlane.f32.xlu1 %v1143_v20 }
 0x2c0   :  { %v1126_v40 = vmul.f32 1.442695, %v1111_v39 }
 0x2c2   :  { %v2281_v41 = vpop.eup %1919  ;;  %1923 = vpow2.f32 %v1126_v40 }
 0x2c3   :  { %v1140_v42 = vsel %vm1079_vm3, %v2281_v41, 0.0 }
 0x2c4   :  { %1141 = vadd.xlane.f32.xlu0 %v1140_v42 }
 0x2c7   :  { %v2285_v43 = vpop.eup %1921 }
 0x2c8   :  { %v1146_v44 = vsel %vm1079_vm3, %v2285_v43, 0.0 }
 0x2c9   :  { %1147 = vadd.xlane.f32.xlu0 %v1146_v44 }
 0x2cc   :  { %v2289_v45 = vpop.eup %1923 }
 0x2cd   :  { %v1149_v46 = vsel %vm1079_vm3, %v2289_v45, 0.0 }
 0x2ce   :  { %1150 = vadd.xlane.f32.xlu1 %v1149_v46 }
 0x336   :  { %v1130_v50 = vpop.xlane.xlu0 %1129 }
 0x337   :  { %1925 = vrcp.f32 %v1130_v50 }
 0x33c   :  { %v1133_v51 = vpop.xlane.xlu1 %1132 }
 0x33d   :  { %1927 = vrcp.f32 %v1133_v51 }
 0x341   :  { %v1926_v52 = vpop.eup %1925  ;;  %v1139_v0 = vpop.xlane.xlu1 %1138 }
 0x342   :  { %v1153_v53 = vmul.f32 %v1926_v52, %v1910_v17 }
 0x344   :  { %1855 = vmatmul.mubr.msk.f32.vlgmr.msra.gmra.mrb[0].mxu1 %vm1176_vm12, %v1153_v53 }
 0x345   :  { %1858 = vmatpush3.msra.mxu1 %v1169_v54  ;;  %1859 = vmatprep.mubr.msk.f32.mxu1 %vm1968_vm11, %v1967_v47 }
 0x346   :  { %v1136_v55 = vpop.xlane.xlu0 %1135  ;;  %1862 = vmatprep.subr.mxu1 %v1967_v47 }
 0x347   :  { %v1928_v56 = vpop.eup %1927  ;;  %1929 = vrcp.f32 %v1136_v55 }
 0x348   :  { %v1155_v57 = vmul.f32 %v1928_v56, %v2268_v22  ;;  %1931 = vrcp.f32 %v1139_v0 }
 0x34a   :  { %1860 = vmatmul.mubr.msk.f32.vlgmr.msra.gmra.mrb[2].mxu1 %vm1176_vm12, %v1155_v57 }
 0x34b   :  { %1863 = vmatpush3.msra.mxu1 %v1170_v1  ;;  %1864 = vmatprep.mubr.msk.f32.mxu1 %vm1968_vm11, %v1967_v47  ;;  %v1145_v59 = vpop.xlane.xlu1 %1144 }
 0x34c   :  { %1867 = vmatprep.subr.mxu1 %v1967_v47 }
 0x351   :  { %v1930_v58 = vpop.eup %1929  ;;  %v1142_v61 = vpop.xlane.xlu0 %1141 }
 0x352   :  { %v1157_v62 = vmul.f32 %v1930_v58, %v1916_v32  ;;  %1933 = vrcp.f32 %v1142_v61  ;;  %v1932_v3 = vpop.eup %1931 }
 0x353   :  { %1935 = vrcp.f32 %v1145_v59  ;;  %v1159_v63 = vmul.f32 %v1932_v3, %v2272_v27 }
 0x354   :  { %1865 = vmatmul.mubr.msk.f32.vlgmr.msra.gmra.mrb[4].mxu1 %vm1176_vm12, %v1157_v62 }
 0x355   :  { %1868 = vmatpush3.msra.mxu1 %v1171_v2  ;;  %1869 = vmatprep.mubr.msk.f32.mxu1 %vm1968_vm11, %v1967_v47 }
 0x356   :  { %v1148_v8 = vpop.xlane.xlu0 %1147  ;;  %1872 = vmatprep.subr.mxu1 %v1967_v47 }
 0x357   :  { %1937 = vrcp.f32 %v1148_v8 }
 0x358   :  { %1870 = vmatmul.mubr.msk.f32.vlgmr.msra.gmra.mrb[6].mxu1 %vm1176_vm12, %v1159_v63 }
 0x359   :  { %1873 = vmatpush3.msra.mxu1 %v1172_v4  ;;  %1874 = vmatprep.mubr.msk.f32.mxu1 %vm1968_vm11, %v1967_v47 }
 0x35a   :  { %1877 = vmatprep.subr.mxu1 %v1967_v47 }
 0x35b   :  { %v1151_v5 = vpop.xlane.xlu1 %1150 }
 0x35c   :  { %v1934_v6 = vpop.eup %1933  ;;  %1939 = vrcp.f32 %v1151_v5 }
 0x35d   :  { %v1161_v10 = vmul.f32 %v1934_v6, %v2281_v41  ;;  %v1936_v7 = vpop.eup %1935 }
 0x35e   :  { %v1163_v12 = vmul.f32 %v1936_v7, %v2277_v37 }
 0x35f   :  { %1875 = vmatmul.mubr.msk.f32.vlgmr.msra.gmra.mrb[8].mxu1 %vm1176_vm12, %v1161_v10 }
 0x360   :  { %1878 = vmatpush3.msra.mxu1 %v1173_v60  ;;  %1879 = vmatprep.mubr.msk.f32.mxu1 %vm1968_vm11, %v1967_v47 }
 0x361   :  { %v1938_v11 = vpop.eup %1937  ;;  %1887 = vmatprep.subr.mxu1 %v1967_v47 }
 0x362   :  { %v1165_v14 = vmul.f32 %v1938_v11, %v2285_v43 }
 0x363   :  { %1880 = vmatmul.mubr.msk.f32.vlgmr.msra.gmra.mrb[10].mxu1 %vm1176_vm12, %v1163_v12 }
 0x364   :  { %1885 = vmatmul.mubr.msk.f32.vlgmr.msra.gmra.mrb[8].mxu0 %vm1176_vm12, %v1165_v14  ;;  %1888 = vmatpush3.msra.mxu1 %v1175_v13 }
 0x365   :  { %1889 = vmatprep.mubr.msk.f32.mxu1 %vm1968_vm11, %v1967_v47 }
 0x366   :  { %v1940_v15 = vpop.eup %1939 }
 0x367   :  { %v1167_v16 = vmul.f32 %v1940_v15, %v2289_v45 }
 0x369   :  { %1890 = vmatmul.mubr.msk.f32.vlgmr.msra.gmra.mrb[12].mxu1 %vm1176_vm12, %v1167_v16 }
 0x417   :  { %v1246_v17 = vpop.f32.mrb[0].mxu1 }
 0x418   :  { %1762 = vst.msk [vmem:[#allocation2] sm:$0x1] %vm1761_vm13, %v1246_v17  ;;  %v1856_v18 = vpop.f32.mrb[1].mxu1 }
 0x41d   :  { %v1319_v9 = vpop.f32.mrb[2].mxu1 }
 0x41e   :  { %1763 = vst.msk [vmem:[#allocation2 + $0x1] sm:$0x1] %vm1761_vm13, %v1319_v9  ;;  %v1861_v19 = vpop.f32.mrb[3].mxu1 }
 0x427   :  { %v1392_v21 = vpop.f32.mrb[4].mxu1 }
 0x428   :  { %1764 = vst.msk [vmem:[#allocation2 + $0x2] sm:$0x1] %vm1761_vm13, %v1392_v21  ;;  %v1866_v22 = vpop.f32.mrb[5].mxu1 }
 0x42b   :  { %v1465_v23 = vpop.f32.mrb[6].mxu1 }
 0x42c   :  { %1765 = vst.msk [vmem:[#allocation2 + $0x3] sm:$0x1] %vm1761_vm13, %v1465_v23  ;;  %v1871_v24 = vpop.f32.mrb[7].mxu1 }
 0x432   :  { %v1538_v25 = vpop.f32.mrb[8].mxu1 }
 0x433   :  { %1766 = vst.msk [vmem:[#allocation2 + $0x4] sm:$0x1] %vm1761_vm13, %v1538_v25  ;;  %v1876_v26 = vpop.f32.mrb[9].mxu1 }
 0x436   :  { %v1611_v27 = vpop.f32.mrb[10].mxu1 }
 0x437   :  { %1767 = vst.msk [vmem:[#allocation2 + $0x5] sm:$0x1] %vm1761_vm13, %v1611_v27  ;;  %v1684_v28 = vpop.f32.mrb[8].mxu0  ;;  %v1881_v29 = vpop.f32.mrb[11].mxu1 }
 0x438   :  { %1768 = vst.msk [vmem:[#allocation2 + $0x6] sm:$0x1] %vm1761_vm13, %v1684_v28  ;;  %v1886_v30 = vpop.f32.mrb[9].mxu0 }
 0x43c   :  { %v1757_v31 = vpop.f32.mrb[12].mxu1 }
 0x43d   :  { %1769 = vst.msk [vmem:[#allocation2 + $0x7] sm:$0x1] %vm1761_vm13, %v1757_v31  ;;  %v1891_v32 = vpop.f32.mrb[13].mxu1 }
 0x43e   :  { %1952 = shalt.err (!%p1949_p4)
}
 0x43f   :  { %s1953_s28 = scalar_lea.hbm %s2381_s6, 128 }
 0x440   :  { %p1954_p5 = scmp.ne.s32.totalorder %s2381_s6, %s1953_s28  ;;  %p1957_p6 = scmp.lt.u32.totalorder %s1953_s28, %s2381_s6 }
 0x442   :  { %p1959_p7 = pnand %p1957_p6, %p1954_p5 }
 0x444   :  { %1962 = shalt.err (!%p1959_p7)
}
 0x445   :  { %s1970_s9 = smov 16   ;;  %s1971_s10 = smov 1  }
 0x446   :  { %1781 = dma.vmem_to_hbm [thread:$0]  %s1776_s24, 128, %s2381_s6, [#allocation3], %s1970_s9, %s1970_s9, %s1971_s10  }
 0x447   :  { %1963 = dma.done.wait [#allocation3], 128  }
 0x448   :  { %1964 = vsyncadd [#allocation3], 4294967168 }
 0x449   :  { %1785 = vsyncpa [#allocation3], 1 }

</bundles_post_ra>
